<compile_context>
chip_gen: v7x
topology: tpu7x:2x2x1
jax: 0.10.0
libtpu: 0.0.40
codegen_flags: <defaults>
</compile_context>

<pallas_src>
import functools

import jax
import jax.numpy as jnp
from jax.experimental import pallas as pl
from jax.experimental.pallas import tpu as pltpu


def _qkv_attn_kernel(x_ref, kt_ref, wqv_ref, v_ref, attn_ref, *, dim_q):
    # x_ref:    (1, TQ, D)          current query tile of x
    # kt_ref:   (1, dim_k, S)       K^T for this batch element (invariant in t)
    # wqv_ref:  (D, dim_q + dim_v)  fused Q|V projection weight (pre-transposed)
    # v_ref:    (1, TQ, dim_v)
    # attn_ref: (1, TQ, S)
    x = x_ref[0]                                               # (TQ, D)

    # One wide MXU matmul for Q and V (f32 accumulation), then slice.
    qv = jnp.dot(x, wqv_ref[...], preferred_element_type=jnp.float32)
    q = qv[:, :dim_q].astype(x.dtype)                          # (TQ, dim_q)
    v_ref[0] = qv[:, dim_q:].astype(v_ref.dtype)               # (TQ, dim_v)

    # Attn = Q @ K^T as a plain row-major matmul (K already transposed outside).
    attn = jnp.dot(q, kt_ref[0], preferred_element_type=jnp.float32)
    attn_ref[0] = attn.astype(attn_ref.dtype)                  # (TQ, S)


def _vmem_capacity_bytes():
    """Physical VMEM per TensorCore; conservative fallback = v7x's 64 MiB."""
    try:
        return int(pltpu.get_tpu_info().vmem_capacity_bytes)
    except Exception:
        return 64 * 1024 * 1024


def _footprint_bytes(tq, *, S, D, dim_q, dim_k, dim_v, in_item, out_item):
    """Per-step VMEM footprint: double-buffered blocks + f32 matmul temps."""
    return (
        2 * tq * D * in_item                   # x query tile
        + 2 * dim_k * S * in_item              # K^T block (re-fetched per batch)
        + 2 * D * (dim_q + dim_v) * in_item    # fused Q|V weight
        + 2 * tq * dim_v * out_item            # V output tile
        + 2 * tq * S * out_item                # attention output tile
        + tq * (dim_q + dim_v) * 4             # qv f32 accumulate
        + tq * S * 4                           # attn f32 accumulate
    )


def _pick_tq(S, budget_bytes, footprint_fn, target=256):
    """Largest multiple of 16 dividing S, <= target, whose footprint fits.

    Falls back to tq = S when S has no multiple-of-16 divisor (tiny/awkward S).
    """
    cands = [t for t in range(16, min(S, target) + 1, 16) if S % t == 0]
    if not cands:
        # TODO(synk): pad S / masked last tile to support large awkward S.
        return S
    for t in sorted(cands, reverse=True):
        if footprint_fn(t) <= budget_bytes:
            return t
    return cands[0]


def multihead_qkv(x, wq_t, wk_t, wv_t, *, tq=None):
    """x: (B, S, d_model); w*_t: (d_model, dim_*) (already transposed so the
    kernel computes x @ W.T as a plain row-major matmul).

    Returns (V, Attn) matching the PyTorch module's `_checkpoint_forward`.
    """
    B, S, D = x.shape
    dim_q = wq_t.shape[1]
    dim_k = wk_t.shape[1]
    dim_v = wv_t.shape[1]
    assert dim_q == dim_k, "dim_q must equal dim_k for Q @ K^T"

    compute_dtype = x.dtype            # pass bf16 inputs to use the bf16 MXU path
    in_item = jnp.dtype(compute_dtype).itemsize
    out_item = jnp.dtype(x.dtype).itemsize

    x_c = x.astype(compute_dtype)
    wqv_t = jnp.concatenate([wq_t, wv_t], axis=1).astype(compute_dtype)

    # K^T precomputed once per batch element (negligible flops vs S^2 attn).
    kt = jnp.einsum("bsd,dk->bks", x_c, wk_t.astype(compute_dtype))   # (B, dim_k, S)

    vmem_cap = _vmem_capacity_bytes()
    footprint_fn = functools.partial(
        _footprint_bytes, S=S, D=D, dim_q=dim_q, dim_k=dim_k, dim_v=dim_v,
        in_item=in_item, out_item=out_item)

    if tq is None:
        tq = _pick_tq(S, int(vmem_cap * 3 // 4), footprint_fn)
    assert S % tq == 0, f"tq={tq} must divide S={S}"
    num_q_tiles = S // tq

    footprint = footprint_fn(tq)
    vmem_limit = int(min(vmem_cap, max(32 * 1024 * 1024, footprint * 3 // 2)))

    flops = 2 * B * S * D * (dim_q + dim_v) + 2 * B * S * S * dim_q
    bytes_accessed = (
        B * S * D * in_item                     # x (read once)
        + B * S * dim_k * in_item               # K^T
        + D * (dim_q + dim_v) * in_item         # fused weight
        + B * S * dim_v * out_item              # V out
        + B * S * S * out_item                  # Attn out
    )

    grid_spec = pltpu.PrefetchScalarGridSpec(
        num_scalar_prefetch=0,
        grid=(B, num_q_tiles),
        in_specs=[
            pl.BlockSpec((1, tq, D), lambda b, t: (b, t, 0)),        # x query tile
            pl.BlockSpec((1, dim_k, S), lambda b, t: (b, 0, 0)),     # K^T (invariant in t)
            pl.BlockSpec((D, dim_q + dim_v), lambda b, t: (0, 0)),   # fused Q|V weight
        ],
        out_specs=[
            pl.BlockSpec((1, tq, dim_v), lambda b, t: (b, t, 0)),    # V tile
            pl.BlockSpec((1, tq, S), lambda b, t: (b, t, 0)),        # Attn tile (lane-dense)
        ],
    )

    kernel = functools.partial(_qkv_attn_kernel, dim_q=dim_q)

    return pl.pallas_call(
        kernel,
        out_shape=(
            jax.ShapeDtypeStruct((B, S, dim_v), x.dtype),   # V
            jax.ShapeDtypeStruct((B, S, S), x.dtype),       # Attn (raw scores)
        ),
        grid_spec=grid_spec,
        compiler_params=pltpu.CompilerParams(
            dimension_semantics=("parallel", "parallel"),
            vmem_limit_bytes=vmem_limit,
        ),
        cost_estimate=pl.CostEstimate(
            flops=flops, transcendentals=0, bytes_accessed=bytes_accessed),
    )(x_c, kt, wqv_t)


def _reference(x, wq_t, wk_t, wv_t):
    q = jnp.einsum("bsd,dk->bsk", x, wq_t)
    k = jnp.einsum("bsd,dk->bsk", x, wk_t)
    v = jnp.einsum("bsd,dv->bsv", x, wv_t)
    attn = jnp.einsum("bsk,btk->bst", q, k)
    return v, attn


if __name__ == "__main__":
    # Small shapes consistent with the module: x is (batch, seq, d_model).
    # TODO(synk): gradient checkpointing / requires_grad bookkeeping in the
    # PyTorch module is autograd machinery with no forward-pass Pallas analog.
    B, S, d_model = 2, 8, 32
    dim_k = d_model   # dim_k defaults to d_model
    dim_v = dim_k     # dim_v defaults to dim_k

    key = jax.random.PRNGKey(0)
    kx, kq, kk, kv = jax.random.split(key, 4)

    x = jax.random.normal(kx, (B, S, d_model), dtype=jnp.float32)

    # nn.Linear weights are (out, in); we store/use the transposed (in, out)
    # form so the kernel computes x @ W.T directly. Deterministic init.
    scale = 1.0 / jnp.sqrt(d_model)
    wq_t = (jax.random.uniform(kq, (d_model, dim_k), minval=-1.0, maxval=1.0) * scale).astype(jnp.float32)
    wk_t = (jax.random.uniform(kk, (d_model, dim_k), minval=-1.0, maxval=1.0) * scale).astype(jnp.float32)
    wv_t = (jax.random.uniform(kv, (d_model, dim_v), minval=-1.0, maxval=1.0) * scale).astype(jnp.float32)

    v_out, attn_out = multihead_qkv(x, wq_t, wk_t, wv_t)
    jax.block_until_ready((v_out, attn_out))

    v_ref, attn_ref = _reference(x, wq_t, wk_t, wv_t)
    assert v_out.shape == (B, S, dim_v)
    assert attn_out.shape == (B, S, S)
    assert jnp.allclose(v_out, v_ref, atol=1e-5, rtol=1e-5)
    assert jnp.allclose(attn_out, attn_ref, atol=1e-5, rtol=1e-5)

    print("KERNEL_OK")
</pallas_src>

<mosaic_0001>
module attributes {stable_mosaic.version = 11 : i64} {
  func.func @_qkv_attn_kernel(%arg0: i32, %arg1: i32, %arg2: memref<1x8x32xf32, #tpu.memory_space<vmem>>, %arg3: memref<1x32x8xf32, #tpu.memory_space<vmem>>, %arg4: memref<32x64xf32, #tpu.memory_space<vmem>>, %arg5: memref<1x8x32xf32, #tpu.memory_space<vmem>>, %arg6: memref<1x8x8xf32, #tpu.memory_space<vmem>>) attributes {dimension_semantics = [#tpu.dimension_semantics<parallel>, #tpu.dimension_semantics<parallel>], iteration_bounds = array<i64: 2, 1>, scalar_prefetch = 0 : i64, scratch_operands = 0 : i64, tpu.core_type = #tpu.core_type<tc>, window_params = [{transform_indices = @transform_0, window_bounds = array<i64: 1, 8, 32>}, {transform_indices = @transform_1, window_bounds = array<i64: 1, 32, 8>}, {pipeline_mode = #tpu.pipeline_mode<synchronous>, transform_indices = @transform_2, window_bounds = array<i64: 32, 64>}, {transform_indices = @transform_3, window_bounds = array<i64: 1, 8, 32>}, {transform_indices = @transform_4, window_bounds = array<i64: 1, 8, 8>}]} {
    %c0 = arith.constant 0 : index
    %c0_0 = arith.constant 0 : index
    %c0_1 = arith.constant 0 : index
    %0 = vector.load %arg2[%c0, %c0_0, %c0_1] : memref<1x8x32xf32, #tpu.memory_space<vmem>>, vector<1x8x32xf32>
    %1 = vector.shape_cast %0 : vector<1x8x32xf32> to vector<8x32xf32>
    %c0_2 = arith.constant 0 : index
    %c0_3 = arith.constant 0 : index
    %2 = vector.load %arg4[%c0_2, %c0_3] : memref<32x64xf32, #tpu.memory_space<vmem>>, vector<32x64xf32>
    %cst = arith.constant dense<0.000000e+00> : vector<8x64xf32>
    %3 = tpu.matmul %1, %2, %cst {dimension_numbers = #tpu.dot_dimension_numbers<[1], [0], [0], [1], [0, 0, 1, 1], [], []>} : vector<8x32xf32>, vector<32x64xf32>, vector<8x64xf32> -> vector<8x64xf32>
    %4 = vector.extract_strided_slice %3 {offsets = [0, 0], sizes = [8, 32], strides = [1, 1]} : vector<8x64xf32> to vector<8x32xf32>
    %5 = vector.extract_strided_slice %3 {offsets = [0, 32], sizes = [8, 32], strides = [1, 1]} : vector<8x64xf32> to vector<8x32xf32>
    %c0_4 = arith.constant 0 : index
    %c0_5 = arith.constant 0 : index
    %c0_6 = arith.constant 0 : index
    %6 = vector.load %arg5[%c0_4, %c0_5, %c0_6] : memref<1x8x32xf32, #tpu.memory_space<vmem>>, vector<1x8x32xf32>
    %7 = vector.shape_cast %6 : vector<1x8x32xf32> to vector<8x32xf32>
    %8 = vector.shape_cast %5 : vector<8x32xf32> to vector<1x8x32xf32>
    tpu.vector_store %arg5[%c0_4, %c0_5, %c0_6], %8 {strides = array<i32>} : memref<1x8x32xf32, #tpu.memory_space<vmem>>, vector<1x8x32xf32>,
    %c0_7 = arith.constant 0 : index
    %c0_8 = arith.constant 0 : index
    %c0_9 = arith.constant 0 : index
    %9 = vector.load %arg3[%c0_7, %c0_8, %c0_9] : memref<1x32x8xf32, #tpu.memory_space<vmem>>, vector<1x32x8xf32>
    %10 = vector.shape_cast %9 : vector<1x32x8xf32> to vector<32x8xf32>
    %cst_10 = arith.constant dense<0.000000e+00> : vector<8x8xf32>
    %11 = tpu.matmul %4, %10, %cst_10 {dimension_numbers = #tpu.dot_dimension_numbers<[1], [0], [0], [1], [0, 0, 1, 1], [], []>} : vector<8x32xf32>, vector<32x8xf32>, vector<8x8xf32> -> vector<8x8xf32>
    %c0_11 = arith.constant 0 : index
    %c0_12 = arith.constant 0 : index
    %c0_13 = arith.constant 0 : index
    %12 = vector.load %arg6[%c0_11, %c0_12, %c0_13] : memref<1x8x8xf32, #tpu.memory_space<vmem>>, vector<1x8x8xf32>
    %13 = vector.shape_cast %12 : vector<1x8x8xf32> to vector<8x8xf32>
    %14 = vector.shape_cast %11 : vector<8x8xf32> to vector<1x8x8xf32>
    tpu.vector_store %arg6[%c0_11, %c0_12, %c0_13], %14 {strides = array<i32>} : memref<1x8x8xf32, #tpu.memory_space<vmem>>, vector<1x8x8xf32>,
    return
  }
  func.func @transform_0(%arg0: i32, %arg1: i32) -> (i32, i32, i32) {
    %c0_i32 = arith.constant 0 : i32
    %c0_i32_0 = arith.constant 0 : i32
    return %arg0, %arg1, %c0_i32 : i32, i32, i32
  }
  func.func @transform_1(%arg0: i32, %arg1: i32) -> (i32, i32, i32) {
    %c0_i32 = arith.constant 0 : i32
    %c0_i32_0 = arith.constant 0 : i32
    %c0_i32_1 = arith.constant 0 : i32
    return %arg0, %c0_i32, %c0_i32_0 : i32, i32, i32
  }
  func.func @transform_2(%arg0: i32, %arg1: i32) -> (i32, i32) {
    %c0_i32 = arith.constant 0 : i32
    %c0_i32_0 = arith.constant 0 : i32
    %c0_i32_1 = arith.constant 0 : i32
    return %c0_i32, %c0_i32_0 : i32, i32
  }
  func.func @transform_3(%arg0: i32, %arg1: i32) -> (i32, i32, i32) {
    %c0_i32 = arith.constant 0 : i32
    %c0_i32_0 = arith.constant 0 : i32
    return %arg0, %arg1, %c0_i32 : i32, i32, i32
  }
  func.func @transform_4(%arg0: i32, %arg1: i32) -> (i32, i32, i32) {
    %c0_i32 = arith.constant 0 : i32
    %c0_i32_0 = arith.constant 0 : i32
    return %arg0, %arg1, %c0_i32 : i32, i32, i32
  }
}

</mosaic_0001>

<bundles_post_ra>
// kernel: tpu_custom_call.1
= control target key start
LH: loop header
LB: loop body
LE: loop exit
PB: predicated region body
PF: predicated region fallthrough
CT: control target
= control target key end

     0   :  { %10 = vsyncpa [#allocation3], 0  ;;  %s1004_s0 = inlined_call_operand.vmem [shape: f32[2,8,32], index: 0, kind: input, shape index: {}]   ;;  %s1005_s1 = inlined_call_operand.vmem [shape: f32[2,32,8], index: 1, kind: input, shape index: {}]   ;;  %s1006_s2 = inlined_call_operand.vmem [shape: f32[32,64], index: 2, kind: input, shape index: {}]   ;;  %s1007_s3 = inlined_call_operand.hbm [shape: f32[2,8,32], index: 3, kind: output, shape index: {0}]   ;;  %s1008_s4 = inlined_call_operand.hbm [shape: f32[2,8,8], index: 4, kind: output, shape index: {1}]  }
   0x1   :  { %12 = vsyncpa [#allocation3 + $0x1], 0 }
   0x2   :  { %13 = vsyncpa [#allocation5], 0 }
   0x3   :  { %15 = vsyncpa [#allocation5 + $0x1], 0  ;;  %s833_s15 = smov 0   ;;  %s835_s16 = smov 0  }
   0x4   :  { %s837_s17 = smov 0   ;;  %s839_s18 = smov 0  }
   0x5   :  { %s841_s19 = smov 0   ;;  %s843_s20 = smov 0  }
   0x6 LB: > { %s563_s21 = sadd.s32 4294967295, %s800_s20   ;;  %s564_s22 = sadd.s32 4294967294, %s800_s20   ;;  %s800_s20 = sphi %s843_s20, %s21_s20   ;;  %s796_s19 = sphi %s841_s19, %s1015_s19   ;;  %s792_s18 = sphi %s839_s18, %s1014_s18   ;;  %s788_s17 = sphi %s837_s17, %s1013_s17   ;;  %s784_s16 = sphi %s835_s16, %s1012_s16   ;;  %s780_s15 = sphi %s833_s15, %s1011_s15  }
   0x7   : > { %s33_s23 = sadd.s32 1, %s796_s19  ;;  %s117_s24 = sadd.s32 1, %s788_s17 }
   0x8   : > { %p35_p0 = scmp.ge.s32.totalorder %s33_s23, 2  ;;  %p127_p1 = scmp.ne.s32.totalorder %s788_s17, %s784_s16 }
   0x9   : > { %p128_p2 = scmp.eq.s32.totalorder %s563_s21, 1  ;;  %p133_p3 = scmp.ne.s32.totalorder %s784_s16, %s780_s15 }
   0xa   : > { %s1017_s23 = smov (%p35_p0, %s33_s23), 0  ;;  %p134_p5 = scmp.eq.s32.totalorder %s564_s22, 1 }
   0xb   : > { %p873_p4 = por %p128_p2, %p127_p1  ;;  %s112_s26 = ssub.s32 %s796_s19, %s1017_s23 }
   0xc   : > { %p567_p6 = scmp.ge.s32.totalorder %s800_s20, 1  ;;  %p115_p7 = scmp.eq.s32.totalorder %s112_s26, 0 }
   0xd   : > { %p880_p8 = por %p134_p5, %p133_p3  ;;  %p201_p9 = scmp.lt.s32.totalorder %s800_s20, 3 }
   0xe   : > { %s886_s28 = scalar_select %p115_p7, %s788_s17, %s117_s24  }
   0xf   : > { %p202_p10 = pnand %p567_p6, %p201_p9 }
  0x10   : > { %v252_v0 = vld [vmem:[%s1006_s2] sm:$0xff] (!%p202_p10)  ;;  %v253_v1 = vld [vmem:[%s1006_s2 + $0x8] sm:$0xff] (!%p202_p10)  ;;  %v254_v2 = vld [vmem:[%s1006_s2 + $0x10] sm:$0xff] (!%p202_p10)  ;;  %v802_v3 = vmov (!%p202_p10), 0.0|0.0   ;;  %vm803_vm0 = vmmov (!%p202_p10), 0   ;;  %v804_v6 = vmov (!%p202_p10), 0.0  }
  0x11   : > { %205 = sbr.rel (%p202_p10) target bundleno = 467 (0x1d3), region = 32  ;;  %614 = vmatprep.subr.bf16.mxu0 (!%p202_p10), %v802_v3  ;;  %v615_v4 = vpack.c.bf16 (!%p202_p10), %v253_v1, %v252_v0  ;;  %v255_v5 = vld [vmem:[%s1006_s2 + $0x18] sm:$0xff] (!%p202_p10)  ;;  %600 = vmatprep.mubr.msk.f32.mxu0 (!%p202_p10), %vm803_vm0, %v804_v6  ;;  %p239_p11 = scmp.lt.s32.totalorder (!%p202_p10), %s792_s18, 1  ;;  %vm256_vm1 = vcmask (!%p202_p10), 261120  }
  0x12   : > { %620 = vmatprep.subr.bf16.mxu1 (!%p202_p10), %v802_v3  ;;  %611 = vmatprep.mubr.msk.f32.mxu1 (!%p202_p10), %vm803_vm0, %v804_v6  ;;  %v618_v7 = vpack.c.bf16 (!%p202_p10), %v255_v5, %v254_v2  ;;  %s805_s30 = smov (!%p202_p10), 96   ;;  %s911_s5 = sand.u32 (!%p202_p10), 1, %s784_s16  }
  0x13   : > { %616 = vmatpush3.bf16.msra.mxu0 (!%p202_p10), %v615_v4  ;;  %s568_s6 = sshll.u32 (!%p202_p10), %s911_s5, 3  ;;  %s577_s7 = sshll.u32 (!%p202_p10), %s792_s18, 7 }
  0x14   : > { %617 = vmatprep.subr.bf16.mxu0 (!%p202_p10), %v802_v3  ;;  %s231_s8 = scalar_lea.vmem (!%p202_p10), [#allocation2], %s568_s6  ;;  %s806_s21 = smov (!%p202_p10), [#allocation2]  }
  0x15   : > { %s433_s9 = sshll.u32 (!%p202_p10), %s231_s8, 4  ;;  %s924_s9 = int_to_ptr.vmem [resolvable:$true] %s433_s9 }
  0x16   : > { %s690_s14 = scalar_lea.vmem (!%p202_p10), %s924_s9, 128 }
  0x17   : > { %619 = vmatpush3.bf16.msra.mxu0 (!%p202_p10), %v618_v7  ;;  %p691_p12 = scmp.ne.s32.totalorder (!%p202_p10), %s924_s9, %s690_s14 }
  0x18   : > { %s240_s11 = scalar_select %p239_p11, %s792_s18, 1 }
  0x19   : > { %p692_p13 = pnand %p691_p12, %p873_p4 }
  0x1a   : > { %s570_s12 = sshll.u32 %s240_s11, 3  ;;  %s581_s13 = sshll.u32 %s240_s11, 5 }
  0x1b   : > { %s245_s22 = scalar_lea.vmem %s1004_s0, %s570_s12  ;;  %s250_s29 = scalar_lea.vmem %s1005_s1, %s581_s13 }
  0x1c   : > { %v251_v8 = vld [vmem:[%s245_s22] sm:$0xff]  ;;  %v336_v10 = vld [vmem:[%s250_s29 + $0x8] sm:$0xff]  ;;  %v337_v12 = vld [vmem:[%s250_s29 + $0x10] sm:$0xff]  ;;  %s922_s12 = scalar_lea.hbm %s1007_s3, %s577_s7  ;;  %s414_s13 = scalar_lea.sflag [#allocation3], %s911_s5 }
  0x1d   : > { %v335_v9 = vld [vmem:[%s250_s29] sm:$0xff]  ;;  %v338_v13 = vld [vmem:[%s250_s29 + $0x18] sm:$0xff]  ;;  %601 = vmatmul.mubr.msk.f32.vlgmr.msra.gmra.mrb[0].mxu0 %vm256_vm1, %v251_v8  ;;  %p693_p0 = pneg %p692_p13  ;;  %s694_s22 = sshll.u32 %s806_s21, 4  ;;  %s695_s22 = int_to_ptr.vmem [resolvable:$false] %s694_s22 }
  0x1e   : > { %v621_v11 = vpack.c.bf16 %v336_v10, %v335_v9  ;;  %v624_v14 = vpack.c.bf16 %v338_v13, %v337_v12  ;;  %s696_s24 = scalar_lea.vmem %s695_s22, 256  ;;  %p697_p1 = scmp.lt.s32.totalorder %s924_s9, %s695_s22 }
  0x1f   : > { %p698_p2 = scmp.lt.s32.totalorder %s696_s24, %s690_s14 }
  0x20   : > { %622 = vmatpush3.bf16.msra.mxu1 %v621_v11 }
  0x21   : > { %623 = vmatprep.subr.bf16.mxu1 %v802_v3  ;;  %p699_p3 = por %p698_p2, %p697_p1 }
  0x23   : > { %p700_p5 = pnand %p699_p3, %p693_p0 }
  0x24   : > { %625 = vmatpush3.bf16.msra.mxu1 %v624_v14 }
  0xf0   : > { %v326_v15 = vpop.f32.mrb[0].mxu0 }
  0xf1   : > { %v602_v16 = vpop.f32.mrb[1].mxu0  ;;  %331 = vrot.lane.b32.xlu0 %v326_v15, %s805_s30  ;;  %612 = vmatmul.mubr.msk.f32.vlgmr.msra.gmra.mrb[0].mxu1 %vm256_vm1, %v326_v15 }
 0x163   : > { %v332_v17 = vpop.permute.xlu0 %331 }
 0x164   : > { %334 = vst.msk [vmem:[%s231_s8] sm:$0xff] %vm256_vm1, %v332_v17 }
 0x165   : > { %703 = shalt.err (!%p700_p5)
}
 0x166   : > { %s704_s26 = scalar_lea.hbm %s922_s12, 128  ;;  %s708_s8 = scalar_lea.hbm %s1007_s3, 256 }
 0x167   : > { %p705_p6 = scmp.ne.s32.totalorder %s922_s12, %s704_s26  ;;  %p709_p10 = scmp.lt.u32.totalorder %s922_s12, %s1007_s3 }
 0x168   : > { %p710_p11 = scmp.lt.u32.totalorder %s708_s8, %s704_s26  ;;  %p712_p13 = scmp.lt.u32.totalorder %s704_s26, %s922_s12 }
 0x169   : > { %p706_p7 = pnand %p705_p6, %p873_p4 }
 0x16a   : > { %p711_p12 = por %p710_p11, %p709_p10 }
 0x16b   : > { %p707_p9 = pneg %p706_p7 }
 0x16c   : > { %p713_p0 = por %p712_p13, %p711_p12 }
 0x16e   : > { %p714_p1 = pnand %p713_p0, %p707_p9 }
 0x170   : > { %717 = shalt.err (!%p714_p1)
}
 0x171   : > { %626 = dma.vmem_to_hbm [thread:$0]  (%p873_p4), %s924_s9, 128, %s922_s12, %s414_s13   ;;  %vm411_vm2 = vcmask 64512  }
 0x172   : > { %s238_s14 = scalar_lea.vmem [#allocation4], %s568_s6  ;;  %s956_s26 = scalar_lea.hbm %s1008_s4, %s577_s7 }
 0x173   : > { %s447_s21 = sshll.u32 %s238_s14, 4  ;;  %s419_s29 = scalar_lea.sflag [#allocation5], %s911_s5  ;;  %s958_s21 = int_to_ptr.vmem [resolvable:$true] %s447_s21 }
 0x174   : > { %s718_s9 = scalar_lea.vmem %s958_s21, 128  ;;  %s807_s18 = smov [#allocation4]  }
 0x175   : > { %p719_p2 = scmp.ne.s32.totalorder %s958_s21, %s718_s9  ;;  %s722_s6 = sshll.u32 %s807_s18, 4  ;;  %s723_s6 = int_to_ptr.vmem [resolvable:$false] %s722_s6 }
 0x176   : > { %s724_s12 = scalar_lea.vmem %s723_s6, 256  ;;  %p725_p6 = scmp.lt.s32.totalorder %s958_s21, %s723_s6 }
 0x177   : > { %p720_p3 = pnand %p719_p2, %p873_p4  ;;  %p726_p7 = scmp.lt.s32.totalorder %s724_s12, %s718_s9 }
 0x179   : > { %p721_p5 = pneg %p720_p3  ;;  %p727_p9 = por %p726_p7, %p725_p6 }
 0x17b   : > { %p728_p10 = pnand %p727_p9, %p721_p5 }
 0x1c4   : > { %v407_v18 = vpop.f32.mrb[0].mxu1 }
 0x1c5   : > { %412 = vst.msk [vmem:[%s238_s14] sm:$0xff] %vm411_vm2, %v407_v18  ;;  %v613_v19 = vpop.f32.mrb[1].mxu1 }
 0x1c6   : > { %731 = shalt.err (!%p728_p10)
}
 0x1c7   : > { %s732_s5 = scalar_lea.hbm %s956_s26, 128  ;;  %s736_s30 = scalar_lea.hbm %s1008_s4, 256 }
 0x1c8   : > { %p733_p11 = scmp.ne.s32.totalorder %s956_s26, %s732_s5  ;;  %p737_p0 = scmp.lt.u32.totalorder %s956_s26, %s1008_s4 }
 0x1c9   : > { %p738_p1 = scmp.lt.u32.totalorder %s736_s30, %s732_s5  ;;  %p740_p3 = scmp.lt.u32.totalorder %s732_s5, %s956_s26 }
 0x1ca   : > { %p734_p12 = pnand %p733_p11, %p873_p4 }
 0x1cb   : > { %p739_p2 = por %p738_p1, %p737_p0 }
 0x1cc   : > { %p735_p13 = pneg %p734_p12 }
 0x1cd   : > { %p741_p5 = por %p740_p3, %p739_p2 }
 0x1cf   : > { %p742_p6 = pnand %p741_p5, %p735_p13 }
 0x1d1   : > { %745 = shalt.err (!%p742_p6)
}
 0x1d2   : > { %627 = dma.vmem_to_hbm [thread:$0]  (%p873_p4), %s958_s21, 128, %s956_s26, %s419_s29  }
 0x1d3 PF: > { %p637_p7 = scmp.ge.s32.totalorder %s800_s20, 2  ;;  %s459_s11 = sand.u32 1, %s780_s15  }
 0x1d4   : > { %s460_s14 = scalar_lea.sflag [#allocation3], %s459_s11 }
 0x1d5   : > { %p631_p9 = pnand %p637_p7, %p880_p8 }
 0x1d7   : > { %771 = dma.done.wait (!%p631_p9), %s460_s14, 128  }
 0x1d8   : > { %773 = vsyncadd (!%p631_p9), %s460_s14, 4294967168  ;;  %s469_s22 = scalar_lea.sflag [#allocation5], %s459_s11 }
 0x1d9   : > { %775 = dma.done.wait (!%p631_p9), %s469_s22, 128  }
 0x1da   : > { %777 = vsyncadd (!%p631_p9), %s469_s22, 4294967168  ;;  %s21_s20 = sadd.s32 1, %s800_s20   ;;  %s1011_s15 = smov %s784_s16 }
 0x1db   : > { %p18_p10 = scmp.ge.s32.totalorder %s21_s20, 4   ;;  %s1012_s16 = smov %s788_s17 }
 0x1dc   : > { %s1013_s17 = smov %s886_s28  ;;  %s1014_s18 = smov %s796_s19 }
 0x1dd   : > { %s1015_s19 = smov %s1017_s23  ;;  %20 = sbr.rel (!%p18_p10) target bundleno = 6 (0x6), region = 87 }
 0x1e4   :  { %474 = vsyncpa [#allocation3], 1 }
 0x1e5   :  { %476 = vsyncpa [#allocation3 + $0x1], 1 }
 0x1e6   :  { %477 = vsyncpa [#allocation5], 1 }
 0x1e7   :  { %479 = vsyncpa [#allocation5 + $0x1], 1 }

</bundles_post_ra>
